<compile_context>
chip_gen: v6e
topology: v6e:2x2x1
jax: 0.10.0
libtpu: 0.0.40
codegen_flags: <defaults>
</compile_context>

<pallas_src>
import functools

import jax
import jax.numpy as jnp
from jax.experimental import pallas as pl
from jax.experimental.pallas import tpu as pltpu


def _round_up(x, m):
    return (x + m - 1) // m * m


def _cdiv(a, b):
    return -(-a // b)


@functools.lru_cache(maxsize=1)
def _tensorcores_per_chip():
    """Best-effort TensorCore count per addressable device (the megacore
    sharding target for the 'parallel' grid axis).  v7x exposes 2 TCs; v4/v5p
    megacore also benefit from an even block split; v5e/v6e are single-TC."""
    try:
        kind = jax.devices()[0].device_kind.lower()
    except Exception:
        return 1
    if "v7" in kind or "7x" in kind:
        return 2
    if "v4" in kind or "v5p" in kind:
        return 2
    return 1


@functools.lru_cache(maxsize=1)
def _vmem_capacity_bytes():
    try:
        return int(pltpu.get_tpu_info().vmem_capacity_bytes)
    except Exception:
        return 64 * 2 ** 20          # conservative: v7x physical VMEM per TC


def _plan_rows(n, tm_target, n_cores):
    """Return (padded_rows, row_tile).

    One big tile when the chart fits (no wasted ~0.35us grid steps on
    single-TC chips); otherwise a block count that is a multiple of the
    TensorCore count so megacore sharding of the 'parallel' axis is balanced
    (a 3-tile grid would leave one v7x core ~33% idle)."""
    n8 = _round_up(max(n, 8), 8)
    nblk = _cdiv(n8, tm_target)
    if n_cores > 1 and n8 >= 256:
        nblk = _round_up(max(nblk, n_cores), n_cores)
    tm = _round_up(_cdiv(n8, nblk), 8)
    return tm * nblk, tm


def _ffn_kernel(x_ref, w1_ref, b1_ref, w2_ref, b2_ref, *rest, norm: bool):
    if norm:
        g_ref, beta_ref, o_ref = rest
    else:
        (o_ref,) = rest

    # Linear1 on the MXU with f32 accumulation: (tm, D) @ (D, H) -> (tm, H).
    h = jnp.dot(x_ref[...], w1_ref[...], preferred_element_type=jnp.float32)
    h = h + b1_ref[...]                       # (1, H) broadcasts over rows

    if norm:
        # LayerNorm over the hidden dim, eps = 1e-5 (torch default), affine.
        # The eps also keeps zero-padded rows (constant h -> var == 0) finite;
        # those rows are sliced off in the wrapper, so do not remove it.
        mean = jnp.mean(h, axis=-1, keepdims=True)
        var = jnp.mean(jnp.square(h - mean), axis=-1, keepdims=True)
        h = (h - mean) * jax.lax.rsqrt(var + 1e-5)
        h = h * g_ref[...] + beta_ref[...]

    h = jnp.maximum(h, 0.0)                   # ReLU; Dropout(p=0) is identity.

    # Linear2: (tm, H) @ (H, L) -> (tm, L).  Cast activations to the weight
    # streaming dtype so the MXU sees a homogeneous matmul.  (With
    # compute_dtype=f32 this cast is a no-op and matches torch numerics.)
    out = jnp.dot(h.astype(w2_ref.dtype), w2_ref[...],
                  preferred_element_type=jnp.float32)
    out = out + b2_ref[...]
    o_ref[...] = out.astype(o_ref.dtype)


@functools.partial(
    jax.jit,
    static_argnames=("norm", "compute_dtype", "out_dtype", "tm_target"))
def feedforward_pallas(span, w1, b1, w2, b2, gamma=None, beta=None, *,
                       norm=False, compute_dtype=jnp.bfloat16,
                       out_dtype=jnp.float32, tm_target=2048):
    """span: (N, D).  w1: (D, H), w2: (H, L)  (torch nn.Linear weights, transposed).

    Returns (N, L) label scores (float32 by default)."""
    N, D = span.shape
    H = w1.shape[1]
    L = w2.shape[1]

    # ---- layout plan (trace-time Python) ----------------------------------
    n_cores = _tensorcores_per_chip()
    Np, tm = _plan_rows(N, tm_target, n_cores)
    n_blocks = Np // tm

    # ---- graph-side prep (fused with the caller's graph by jit) -----------
    x = span.astype(compute_dtype)
    if Np != N:
        x = jnp.pad(x, ((0, Np - N), (0, 0)))

    w1c = w1.astype(compute_dtype)
    w2c = w2.astype(compute_dtype)
    b1c = jnp.asarray(b1, jnp.float32).reshape(1, H)
    b2c = jnp.asarray(b2, jnp.float32).reshape(1, L)

    args = [x, w1c, b1c, w2c, b2c]
    if norm:
        g = (jnp.ones((1, H), jnp.float32) if gamma is None
             else jnp.asarray(gamma, jnp.float32).reshape(1, H))
        bt = (jnp.zeros((1, H), jnp.float32) if beta is None
              else jnp.asarray(beta, jnp.float32).reshape(1, H))
        args += [g, bt]

    kernel = functools.partial(_ffn_kernel, norm=norm)

    # Only raise the scoped-VMEM limit when the double-buffered row tiles plus
    # resident weights actually need it; cap at half the physical capacity
    # (keeps headroom on v7x's 64 MiB VMEM, generous on v5e/v6e's 128 MiB).
    in_b = jnp.dtype(compute_dtype).itemsize
    out_b = jnp.dtype(out_dtype).itemsize
    est = (2 * tm * D * in_b + 2 * tm * L * out_b
           + 2 * (D * H + H * L) * in_b + 8 * 4 * (H + L))
    vmem_limit = (int(min(1.5 * est, _vmem_capacity_bytes() // 2))
                  if est > 24 * 2 ** 20 else None)

    def const(shape):
        # Grid-invariant operands (weights / biases are only a few KB, so the
        # default double buffer is negligible -- no pl.Buffered(1) needed).
        return pl.BlockSpec(shape, lambda i: (0, 0))

    in_specs = [
        pl.BlockSpec((tm, D), lambda i: (i, 0)),    # span rows, tiled
        const((D, H)),                              # W1
        const((1, H)),                              # b1
        const((H, L)),                              # W2 (real L columns only)
        const((1, L)),                              # b2
    ]
    if norm:
        in_specs += [const((1, H)), const((1, H))]  # gamma, beta

    grid_spec = pltpu.PrefetchScalarGridSpec(
        num_scalar_prefetch=0,
        grid=(n_blocks,),
        in_specs=in_specs,
        # Output last dim == full array last dim (legal even when L < 128);
        # the HBM writeback per tile is a contiguous tm*L*itemsize chunk, so
        # only real label bytes hit HBM (no 128-lane zero padding).
        out_specs=pl.BlockSpec((tm, L), lambda i: (i, 0)),
    )

    out_padded = pl.pallas_call(
        kernel,
        out_shape=jax.ShapeDtypeStruct((Np, L), out_dtype),
        grid_spec=grid_spec,
        compiler_params=pltpu.CompilerParams(
            dimension_semantics=("parallel",),
            vmem_limit_bytes=vmem_limit),
    )(*args)

    return out_padded[:N, :]


# ------------------------- reference / test utils ---------------------------

def _orthogonal(key, rows, cols):
    """Deterministic orthogonal init (matches nn.init.orthogonal_ semantics)."""
    n = max(rows, cols)
    a = jax.random.normal(key, (n, n), dtype=jnp.float32)
    q, r = jnp.linalg.qr(a)
    s = jnp.where(jnp.diag(r) >= 0, 1.0, -1.0)
    q = q * s[None, :]
    return q[:rows, :cols]


def reference_ffn(span, w1, b1, w2, b2, gamma=None, beta=None, *,
                  norm=False, compute_dtype=jnp.float32):
    f32 = jnp.float32
    x = span.astype(compute_dtype).astype(f32)
    w1f = w1.astype(compute_dtype).astype(f32)
    w2f = w2.astype(compute_dtype).astype(f32)
    h = x @ w1f + jnp.asarray(b1, f32).reshape(1, -1)
    if norm:
        mean = h.mean(-1, keepdims=True)
        var = ((h - mean) ** 2).mean(-1, keepdims=True)
        h = (h - mean) / jnp.sqrt(var + 1e-5)
        h = (h * jnp.asarray(gamma, f32).reshape(1, -1)
             + jnp.asarray(beta, f32).reshape(1, -1))
    h = jnp.maximum(h, 0.0)
    h = h.astype(compute_dtype).astype(f32)
    return h @ w2f + jnp.asarray(b2, f32).reshape(1, -1)


if __name__ == "__main__":
    key = jax.random.PRNGKey(0)
    k_span, k_w1, k_b1, k_w2, k_b2, k_span2 = jax.random.split(key, 6)

    # Shapes implied by the module: span features = lstm_dim, outputs =
    # vocab.num_parse_label.  A sentence of length 24 has 24*25/2 = 300 chart
    # spans (also exercises the row-padding path).
    lstm_dim = 32
    label_hidden_dim = 32
    num_parse_label = 16
    sen_len = 24
    num_spans = sen_len * (sen_len + 1) // 2   # 300

    span = jax.random.normal(k_span, (num_spans, lstm_dim), dtype=jnp.float32)

    # PyTorch nn.Linear weight is (out, in); we store the transpose (in, out).
    w1 = _orthogonal(k_w1, label_hidden_dim, lstm_dim).T           # (D, H)
    b1 = (jax.random.uniform(k_b1, (label_hidden_dim,)) - 0.5) * 0.1
    w2 = _orthogonal(k_w2, num_parse_label, label_hidden_dim).T    # (H, L)
    b2 = (jax.random.uniform(k_b2, (num_parse_label,)) - 0.5) * 0.1
    gamma = jnp.ones((label_hidden_dim,), jnp.float32)
    beta = jnp.zeros((label_hidden_dim,), jnp.float32)

    # ---- Test 1: default config (norm=False, bf16 streaming). ----
    out = feedforward_pallas(span, w1, b1, w2, b2, norm=False,
                             compute_dtype=jnp.bfloat16)
    out = jax.block_until_ready(out)
    ref = reference_ffn(span, w1, b1, w2, b2, norm=False,
                        compute_dtype=jnp.bfloat16)
    assert out.shape == (num_spans, num_parse_label)
    assert jnp.allclose(out, ref, atol=2e-2, rtol=2e-2), \
        float(jnp.max(jnp.abs(out - ref)))

    # ---- Test 2: norm=True path, f32 streaming (tight tolerance). ----
    out_n = feedforward_pallas(span, w1, b1, w2, b2, gamma, beta, norm=True,
                               compute_dtype=jnp.float32)
    out_n = jax.block_until_ready(out_n)
    ref_n = reference_ffn(span, w1, b1, w2, b2, gamma, beta, norm=True,
                          compute_dtype=jnp.float32)
    assert jnp.allclose(out_n, ref_n, atol=5e-3, rtol=5e-3), \
        float(jnp.max(jnp.abs(out_n - ref_n)))

    # ---- Test 3: batched charts (many sentences' spans concatenated); on
    # multi-TC chips this exercises the even multi-block "parallel" split. ----
    big_n = 1300
    span_big = jax.random.normal(k_span2, (big_n, lstm_dim), dtype=jnp.float32)
    out_b = feedforward_pallas(span_big, w1, b1, w2, b2, norm=False,
                               compute_dtype=jnp.bfloat16)
    out_b = jax.block_until_ready(out_b)
    ref_b = reference_ffn(span_big, w1, b1, w2, b2, norm=False,
                          compute_dtype=jnp.bfloat16)
    assert out_b.shape == (big_n, num_parse_label)
    assert jnp.allclose(out_b, ref_b, atol=2e-2, rtol=2e-2), \
        float(jnp.max(jnp.abs(out_b - ref_b)))

    # ---- Test 4: jit-cache reuse (same shapes, new data -> no rebuild). ----
    out2 = jax.block_until_ready(
        feedforward_pallas(span * 0.5, w1, b1, w2, b2, norm=False,
                           compute_dtype=jnp.bfloat16))
    ref2 = reference_ffn(span * 0.5, w1, b1, w2, b2, norm=False,
                         compute_dtype=jnp.bfloat16)
    assert jnp.allclose(out2, ref2, atol=2e-2, rtol=2e-2)

    # TODO(synk): CKY / trace_back (data-dependent sequential DP tree decoding)
    # is not part of forward(); it stays host-side rather than being faked here.

    print("KERNEL_OK")
</pallas_src>

<mosaic_0001>
module attributes {stable_mosaic.version = 11 : i64} {
  func.func @_ffn_kernel(%arg0: i32, %arg1: memref<304x32xbf16, #tpu.memory_space<vmem>>, %arg2: memref<32x32xbf16, #tpu.memory_space<vmem>>, %arg3: memref<1x32xf32, #tpu.memory_space<vmem>>, %arg4: memref<32x16xbf16, #tpu.memory_space<vmem>>, %arg5: memref<1x16xf32, #tpu.memory_space<vmem>>, %arg6: memref<304x16xf32, #tpu.memory_space<vmem>>) attributes {dimension_semantics = [#tpu.dimension_semantics<parallel>], iteration_bounds = array<i64: 1>, scalar_prefetch = 0 : i64, scratch_operands = 0 : i64, tpu.core_type = #tpu.core_type<tc>, window_params = [{transform_indices = @transform_0, window_bounds = array<i64: 304, 32>}, {pipeline_mode = #tpu.pipeline_mode<synchronous>, transform_indices = @transform_1, window_bounds = array<i64: 32, 32>}, {pipeline_mode = #tpu.pipeline_mode<synchronous>, transform_indices = @transform_2, window_bounds = array<i64: 1, 32>}, {pipeline_mode = #tpu.pipeline_mode<synchronous>, transform_indices = @transform_3, window_bounds = array<i64: 32, 16>}, {pipeline_mode = #tpu.pipeline_mode<synchronous>, transform_indices = @transform_4, window_bounds = array<i64: 1, 16>}, {transform_indices = @transform_5, window_bounds = array<i64: 304, 16>}]} {
    %c0 = arith.constant 0 : index
    %c0_0 = arith.constant 0 : index
    %0 = vector.load %arg1[%c0, %c0_0] : memref<304x32xbf16, #tpu.memory_space<vmem>>, vector<304x32xbf16>
    %c0_1 = arith.constant 0 : index
    %c0_2 = arith.constant 0 : index
    %1 = vector.load %arg2[%c0_1, %c0_2] : memref<32x32xbf16, #tpu.memory_space<vmem>>, vector<32x32xbf16>
    %cst = arith.constant dense<0.000000e+00> : vector<304x32xf32>
    %2 = tpu.matmul %0, %1, %cst {dimension_numbers = #tpu.dot_dimension_numbers<[1], [0], [0], [1], [0, 0, 1, 1], [], []>} : vector<304x32xbf16>, vector<32x32xbf16>, vector<304x32xf32> -> vector<304x32xf32>
    %c0_3 = arith.constant 0 : index
    %c0_4 = arith.constant 0 : index
    %3 = vector.load %arg3[%c0_3, %c0_4] : memref<1x32xf32, #tpu.memory_space<vmem>>, vector<1x32xf32>
    %4 = vector.broadcast %3 : vector<1x32xf32> to vector<304x32xf32>
    %5 = arith.addf %2, %4 : vector<304x32xf32>
    %cst_5 = arith.constant 0.000000e+00 : f32
    %6 = vector.broadcast %cst_5 : f32 to vector<304x32xf32>
    %7 = arith.maximumf %5, %6 : vector<304x32xf32>
    %8 = arith.truncf %7 : vector<304x32xf32> to vector<304x32xbf16>
    %c0_6 = arith.constant 0 : index
    %c0_7 = arith.constant 0 : index
    %9 = vector.load %arg4[%c0_6, %c0_7] : memref<32x16xbf16, #tpu.memory_space<vmem>>, vector<32x16xbf16>
    %cst_8 = arith.constant dense<0.000000e+00> : vector<304x16xf32>
    %10 = tpu.matmul %8, %9, %cst_8 {dimension_numbers = #tpu.dot_dimension_numbers<[1], [0], [0], [1], [0, 0, 1, 1], [], []>} : vector<304x32xbf16>, vector<32x16xbf16>, vector<304x16xf32> -> vector<304x16xf32>
    %c0_9 = arith.constant 0 : index
    %c0_10 = arith.constant 0 : index
    %11 = vector.load %arg5[%c0_9, %c0_10] : memref<1x16xf32, #tpu.memory_space<vmem>>, vector<1x16xf32>
    %12 = vector.broadcast %11 : vector<1x16xf32> to vector<304x16xf32>
    %13 = arith.addf %10, %12 : vector<304x16xf32>
    %c0_11 = arith.constant 0 : index
    %c0_12 = arith.constant 0 : index
    %14 = vector.load %arg6[%c0_11, %c0_12] : memref<304x16xf32, #tpu.memory_space<vmem>>, vector<304x16xf32>
    tpu.vector_store %arg6[%c0_11, %c0_12], %13 {strides = array<i32>} : memref<304x16xf32, #tpu.memory_space<vmem>>, vector<304x16xf32>,
    return
  }
  func.func @transform_0(%arg0: i32) -> (i32, i32) {
    %c0_i32 = arith.constant 0 : i32
    %c0_i32_0 = arith.constant 0 : i32
    return %arg0, %c0_i32 : i32, i32
  }
  func.func @transform_1(%arg0: i32) -> (i32, i32) {
    %c0_i32 = arith.constant 0 : i32
    %c0_i32_0 = arith.constant 0 : i32
    %c0_i32_1 = arith.constant 0 : i32
    return %c0_i32, %c0_i32_0 : i32, i32
  }
  func.func @transform_2(%arg0: i32) -> (i32, i32) {
    %c0_i32 = arith.constant 0 : i32
    %c0_i32_0 = arith.constant 0 : i32
    %c0_i32_1 = arith.constant 0 : i32
    return %c0_i32, %c0_i32_0 : i32, i32
  }
  func.func @transform_3(%arg0: i32) -> (i32, i32) {
    %c0_i32 = arith.constant 0 : i32
    %c0_i32_0 = arith.constant 0 : i32
    %c0_i32_1 = arith.constant 0 : i32
    return %c0_i32, %c0_i32_0 : i32, i32
  }
  func.func @transform_4(%arg0: i32) -> (i32, i32) {
    %c0_i32 = arith.constant 0 : i32
    %c0_i32_0 = arith.constant 0 : i32
    %c0_i32_1 = arith.constant 0 : i32
    return %c0_i32, %c0_i32_0 : i32, i32
  }
  func.func @transform_5(%arg0: i32) -> (i32, i32) {
    %c0_i32 = arith.constant 0 : i32
    %c0_i32_0 = arith.constant 0 : i32
    return %arg0, %c0_i32 : i32, i32
  }
}

</mosaic_0001>

<bundles_post_ra>
// kernel: feedforward_pallas.1
= control target key start
LH: loop header
LB: loop body
LE: loop exit
PB: predicated region body
PF: predicated region fallthrough
CT: control target
= control target key end

     0   :  { %v1075_v0 = vmov 0.0   ;;  %vm1076_vm0 = vmmov 0   ;;  %vm177_vm1 = vcmask 261120   ;;  %vm742_vm2 = vcmask 130048   ;;  %s1532_s1 = inlined_call_operand.vmem [shape: bf16[32,32], index: 1, kind: input, shape index: {}]   ;;  %s1533_s0 = inlined_call_operand.vmem [shape: bf16[304,32], index: 0, kind: input, shape index: {}]   ;;  %s1534_s3 = inlined_call_operand.vmem [shape: bf16[32,16], index: 3, kind: input, shape index: {}]   ;;  %s1535_s2 = inlined_call_operand.vmem [shape: f32[1,32], index: 2, kind: input, shape index: {}]   ;;  %s1536_s4 = inlined_call_operand.vmem [shape: f32[1,16], index: 4, kind: input, shape index: {}]   ;;  %s1537_s5 = inlined_call_operand.vmem [shape: f32[304,16], index: 5, kind: output, shape index: {}]  }
   0x1   :  { %890 = vmatprep.subr.bf16.mxu0 %v1075_v0  ;;  %v1052_v1 = vld [vmem:[%s1532_s1 + $0x8] sm:$0xff]   ;;  %894 = vmatprep.mubr.msk.bf16.mxu0 %vm1076_vm0, %v1075_v0  ;;  %v1053_v2 = vld [vmem:[%s1532_s1] sm:$0xff]   ;;  %v1056_v5 = vld [vmem:[%s1533_s0 + $0x10] sm:$0xff]  }
   0x2   :  { %970 = vmatprep.subr.bf16.mxu1 %v1075_v0  ;;  %974 = vmatprep.mubr.msk.bf16.mxu1 %vm1076_vm0, %v1075_v0  ;;  %v1054_v3 = vld [vmem:[%s1533_s0] sm:$0xff]   ;;  %v1055_v4 = vld [vmem:[%s1533_s0 + $0x8] sm:$0xff]   ;;  %v1057_v6 = vld [vmem:[%s1533_s0 + $0x18] sm:$0xff]  }
   0x3   :  { %891 = vmatpush3.bf16.msra.mxu0 %v1052_v1  ;;  %v1058_v7 = vld [vmem:[%s1533_s0 + $0x20] sm:$0xff]   ;;  %v1059_v8 = vld [vmem:[%s1533_s0 + $0x28] sm:$0xff]   ;;  %v1060_v9 = vld [vmem:[%s1533_s0 + $0x30] sm:$0xff]  }
   0x4   :  { %892 = vmatprep.subr.bf16.mxu0 %v1075_v0  ;;  %v1061_v10 = vld [vmem:[%s1533_s0 + $0x38] sm:$0xff]   ;;  %v1062_v11 = vld [vmem:[%s1533_s0 + $0x40] sm:$0xff]   ;;  %v1073_v12 = vld [vmem:[%s1534_s3 + $0x8] sm:$0xff]  }
   0x5   :  { %v1063_v13 = vld [vmem:[%s1533_s0 + $0x48] sm:$0xff]   ;;  %971 = vmatpush3.bf16.msra.mxu1 %v1073_v12  ;;  %v1074_v14 = vld [vmem:[%s1534_s3] sm:$0xff]   ;;  %v1064_v15 = vld [vmem:[%s1533_s0 + $0x50] sm:$0xff]  }
   0x6   :  { %972 = vmatprep.subr.bf16.mxu1 %v1075_v0  ;;  %v1065_v16 = vld [vmem:[%s1533_s0 + $0x58] sm:$0xff]   ;;  %v1066_v17 = vld [vmem:[%s1533_s0 + $0x60] sm:$0xff]   ;;  %v1067_v18 = vld [vmem:[%s1533_s0 + $0x68] sm:$0xff]  }
   0x7   :  { %893 = vmatpush3.bf16.msra.mxu0 %v1053_v2  ;;  %v1068_v19 = vld [vmem:[%s1533_s0 + $0x70] sm:$0xff]   ;;  %v1069_v20 = vld [vmem:[%s1533_s0 + $0x78] sm:$0xff]   ;;  %v1070_v21 = vld [vmem:[%s1533_s0 + $0x80] sm:$0xff]  }
   0x8   :  { %v1071_v22 = vld [vmem:[%s1533_s0 + $0x88] sm:$0xff]   ;;  %v1072_v23 = vld [vmem:[%s1533_s0 + $0x90] sm:$0xff]   ;;  %v1242_v24 = vld [vmem:[%s1535_s2] ss:$0 sm:$0xff] }
   0x9   :  { %973 = vmatpush3.bf16.msra.mxu1 %v1074_v14 }
   0xa   :  { %895 = vmatmul.mubr.msk.bf16.vlgmr.msra.gmra.mxu0 %vm177_vm1, %v1054_v3 }
   0xb   :  { %898 = vmatprep.mubr.msk.bf16.mxu0 %vm1076_vm0, %v1075_v0 }
  0x12   :  { %899 = vmatmul.mubr.msk.bf16.gmra.mxu0 %vm177_vm1, %v1055_v4 }
  0x13   :  { %902 = vmatprep.mubr.msk.bf16.mxu0 %vm1076_vm0, %v1075_v0 }
  0x1a   :  { %903 = vmatmul.mubr.msk.bf16.gmra.mxu0 %vm177_vm1, %v1056_v5 }
  0x1b   :  { %906 = vmatprep.mubr.msk.bf16.mxu0 %vm1076_vm0, %v1075_v0 }
  0x22   :  { %907 = vmatmul.mubr.msk.bf16.gmra.mxu0 %vm177_vm1, %v1057_v6 }
  0x23   :  { %910 = vmatprep.mubr.msk.bf16.mxu0 %vm1076_vm0, %v1075_v0 }
  0x2a   :  { %911 = vmatmul.mubr.msk.bf16.gmra.mxu0 %vm177_vm1, %v1058_v7 }
  0x2b   :  { %914 = vmatprep.mubr.msk.bf16.mxu0 %vm1076_vm0, %v1075_v0 }
  0x32   :  { %915 = vmatmul.mubr.msk.bf16.gmra.mxu0 %vm177_vm1, %v1059_v8 }
  0x33   :  { %918 = vmatprep.mubr.msk.bf16.mxu0 %vm1076_vm0, %v1075_v0 }
  0x3a   :  { %919 = vmatmul.mubr.msk.bf16.gmra.mxu0 %vm177_vm1, %v1060_v9 }
  0x3b   :  { %922 = vmatprep.mubr.msk.bf16.mxu0 %vm1076_vm0, %v1075_v0 }
  0x42   :  { %923 = vmatmul.mubr.msk.bf16.gmra.mxu0 %vm177_vm1, %v1061_v10 }
  0x43   :  { %926 = vmatprep.mubr.msk.bf16.mxu0 %vm1076_vm0, %v1075_v0 }
  0x4a   :  { %927 = vmatmul.mubr.msk.bf16.gmra.mxu0 %vm177_vm1, %v1062_v11 }
  0x4b   :  { %930 = vmatprep.mubr.msk.bf16.mxu0 %vm1076_vm0, %v1075_v0 }
  0x52   :  { %931 = vmatmul.mubr.msk.bf16.gmra.mxu0 %vm177_vm1, %v1063_v13 }
  0x53   :  { %934 = vmatprep.mubr.msk.bf16.mxu0 %vm1076_vm0, %v1075_v0 }
  0x5a   :  { %935 = vmatmul.mubr.msk.bf16.gmra.mxu0 %vm177_vm1, %v1064_v15 }
  0x5b   :  { %938 = vmatprep.mubr.msk.bf16.mxu0 %vm1076_vm0, %v1075_v0 }
  0x62   :  { %939 = vmatmul.mubr.msk.bf16.gmra.mxu0 %vm177_vm1, %v1065_v16 }
  0x63   :  { %942 = vmatprep.mubr.msk.bf16.mxu0 %vm1076_vm0, %v1075_v0 }
  0x6a   :  { %943 = vmatmul.mubr.msk.bf16.gmra.mxu0 %vm177_vm1, %v1066_v17 }
  0x6b   :  { %946 = vmatprep.mubr.msk.bf16.mxu0 %vm1076_vm0, %v1075_v0 }
  0x72   :  { %947 = vmatmul.mubr.msk.bf16.gmra.mxu0 %vm177_vm1, %v1067_v18 }
  0x73   :  { %950 = vmatprep.mubr.msk.bf16.mxu0 %vm1076_vm0, %v1075_v0 }
  0x7a   :  { %951 = vmatmul.mubr.msk.bf16.gmra.mxu0 %vm177_vm1, %v1068_v19 }
  0x7b   :  { %954 = vmatprep.mubr.msk.bf16.mxu0 %vm1076_vm0, %v1075_v0 }
  0x82   :  { %955 = vmatmul.mubr.msk.bf16.gmra.mxu0 %vm177_vm1, %v1069_v20 }
  0x83   :  { %958 = vmatprep.mubr.msk.bf16.mxu0 %vm1076_vm0, %v1075_v0 }
  0x8a   :  { %959 = vmatmul.mubr.msk.bf16.gmra.mxu0 %vm177_vm1, %v1070_v21 }
  0x8b   :  { %962 = vmatprep.mubr.msk.bf16.mxu0 %vm1076_vm0, %v1075_v0 }
  0x92   :  { %963 = vmatmul.mubr.msk.bf16.gmra.mxu0 %vm177_vm1, %v1071_v22 }
  0x93   :  { %966 = vmatprep.mubr.msk.bf16.mxu0 %vm1076_vm0, %v1075_v0 }
  0x9a   :  { %967 = vmatmul.mubr.msk.bf16.gmra.mxu0 %vm177_vm1, %v1072_v23 }
  0xca   :  { %v269_v25 = vpop.f32.mrf.mxu0 }
  0xcb   :  { %v270_v27 = vadd.f32 %v1242_v24, %v269_v25 }
  0xcc   :  { %v896_v26 = vpop.f32.mrf.mxu0 }
  0xcd   :  { %v420_v31 = vmax.f32 %v270_v27, 0.0 }
  0xce   :  { %v272_v28 = vpop.f32.mrf.mxu0 }
  0xcf   :  { %v273_v29 = vadd.f32 %v1242_v24, %v272_v28 }
  0xd0   :  { %v897_v30 = vpop.f32.mrf.mxu0 }
  0xd1   :  { %v421_v32 = vmax.f32 %v273_v29, 0.0 }
  0xd2   :  { %v277_v33 = vpop.f32.mrf.mxu0 }
  0xd3   :  { %v458_v34 = vpack.c.bf16 %v421_v32, %v420_v31  ;;  %v278_v36 = vadd.f32 %v1242_v24, %v277_v33 }
  0xd4   :  { %v900_v35 = vpop.f32.mrf.mxu0 }
  0xd5   :  { %975 = vmatmul.mubr.msk.bf16.vlgmr.msra.gmra.mxu1 %vm177_vm1, %v458_v34  ;;  %v422_v40 = vmax.f32 %v278_v36, 0.0 }
  0xd6   :  { %v280_v37 = vpop.f32.mrf.mxu0  ;;  %978 = vmatprep.mubr.msk.bf16.mxu1 %vm1076_vm0, %v1075_v0 }
  0xd7   :  { %v281_v38 = vadd.f32 %v1242_v24, %v280_v37 }
  0xd8   :  { %v901_v39 = vpop.f32.mrf.mxu0 }
  0xd9   :  { %v423_v41 = vmax.f32 %v281_v38, 0.0 }
  0xda   :  { %v285_v42 = vpop.f32.mrf.mxu0 }
  0xdb   :  { %v459_v43 = vpack.c.bf16 %v423_v41, %v422_v40  ;;  %v286_v45 = vadd.f32 %v1242_v24, %v285_v42 }
  0xdc   :  { %v904_v44 = vpop.f32.mrf.mxu0 }
  0xdd   :  { %979 = vmatmul.mubr.msk.bf16.gmra.mxu1 %vm177_vm1, %v459_v43  ;;  %v424_v49 = vmax.f32 %v286_v45, 0.0 }
  0xde   :  { %v288_v46 = vpop.f32.mrf.mxu0  ;;  %982 = vmatprep.mubr.msk.bf16.mxu1 %vm1076_vm0, %v1075_v0 }
  0xdf   :  { %v289_v47 = vadd.f32 %v1242_v24, %v288_v46 }
  0xe0   :  { %v905_v48 = vpop.f32.mrf.mxu0 }
  0xe1   :  { %v425_v50 = vmax.f32 %v289_v47, 0.0 }
  0xe2   :  { %v293_v51 = vpop.f32.mrf.mxu0 }
  0xe3   :  { %v460_v52 = vpack.c.bf16 %v425_v50, %v424_v49  ;;  %v294_v54 = vadd.f32 %v1242_v24, %v293_v51 }
  0xe4   :  { %v908_v53 = vpop.f32.mrf.mxu0 }
  0xe5   :  { %983 = vmatmul.mubr.msk.bf16.gmra.mxu1 %vm177_vm1, %v460_v52  ;;  %v426_v58 = vmax.f32 %v294_v54, 0.0 }
  0xe6   :  { %v296_v55 = vpop.f32.mrf.mxu0  ;;  %986 = vmatprep.mubr.msk.bf16.mxu1 %vm1076_vm0, %v1075_v0 }
  0xe7   :  { %v297_v56 = vadd.f32 %v1242_v24, %v296_v55 }
  0xe8   :  { %v909_v57 = vpop.f32.mrf.mxu0 }
  0xe9   :  { %v427_v59 = vmax.f32 %v297_v56, 0.0 }
  0xea   :  { %v301_v60 = vpop.f32.mrf.mxu0 }
  0xeb   :  { %v461_v61 = vpack.c.bf16 %v427_v59, %v426_v58  ;;  %v302_v63 = vadd.f32 %v1242_v24, %v301_v60 }
  0xec   :  { %v912_v62 = vpop.f32.mrf.mxu0 }
  0xed   :  { %987 = vmatmul.mubr.msk.bf16.gmra.mxu1 %vm177_vm1, %v461_v61  ;;  %v428_v4 = vmax.f32 %v302_v63, 0.0 }
  0xee   :  { %v304_v1 = vpop.f32.mrf.mxu0  ;;  %990 = vmatprep.mubr.msk.bf16.mxu1 %vm1076_vm0, %v1075_v0 }
  0xef   :  { %v305_v2 = vadd.f32 %v1242_v24, %v304_v1 }
  0xf0   :  { %v913_v3 = vpop.f32.mrf.mxu0 }
  0xf1   :  { %v429_v5 = vmax.f32 %v305_v2, 0.0 }
  0xf2   :  { %v309_v6 = vpop.f32.mrf.mxu0 }
  0xf3   :  { %v462_v7 = vpack.c.bf16 %v429_v5, %v428_v4  ;;  %v310_v9 = vadd.f32 %v1242_v24, %v309_v6 }
  0xf4   :  { %v916_v8 = vpop.f32.mrf.mxu0 }
  0xf5   :  { %991 = vmatmul.mubr.msk.bf16.gmra.mxu1 %vm177_vm1, %v462_v7  ;;  %v430_v13 = vmax.f32 %v310_v9, 0.0 }
  0xf6   :  { %v312_v10 = vpop.f32.mrf.mxu0  ;;  %994 = vmatprep.mubr.msk.bf16.mxu1 %vm1076_vm0, %v1075_v0 }
  0xf7   :  { %v313_v11 = vadd.f32 %v1242_v24, %v312_v10 }
  0xf8   :  { %v917_v12 = vpop.f32.mrf.mxu0 }
  0xf9   :  { %v431_v14 = vmax.f32 %v313_v11, 0.0 }
  0xfa   :  { %v317_v15 = vpop.f32.mrf.mxu0 }
  0xfb   :  { %v463_v16 = vpack.c.bf16 %v431_v14, %v430_v13  ;;  %v318_v18 = vadd.f32 %v1242_v24, %v317_v15 }
  0xfc   :  { %v920_v17 = vpop.f32.mrf.mxu0 }
  0xfd   :  { %995 = vmatmul.mubr.msk.bf16.gmra.mxu1 %vm177_vm1, %v463_v16  ;;  %v432_v22 = vmax.f32 %v318_v18, 0.0 }
  0xfe   :  { %v320_v19 = vpop.f32.mrf.mxu0  ;;  %998 = vmatprep.mubr.msk.bf16.mxu1 %vm1076_vm0, %v1075_v0 }
  0xff   :  { %v321_v20 = vadd.f32 %v1242_v24, %v320_v19 }
 0x100   :  { %v921_v21 = vpop.f32.mrf.mxu0 }
 0x101   :  { %v433_v23 = vmax.f32 %v321_v20, 0.0 }
 0x102   :  { %v325_v25 = vpop.f32.mrf.mxu0 }
 0x103   :  { %v464_v26 = vpack.c.bf16 %v433_v23, %v432_v22  ;;  %v326_v28 = vadd.f32 %v1242_v24, %v325_v25 }
 0x104   :  { %v924_v27 = vpop.f32.mrf.mxu0 }
 0x105   :  { %999 = vmatmul.mubr.msk.bf16.gmra.mxu1 %vm177_vm1, %v464_v26  ;;  %v434_v32 = vmax.f32 %v326_v28, 0.0 }
 0x106   :  { %v328_v29 = vpop.f32.mrf.mxu0  ;;  %1002 = vmatprep.mubr.msk.bf16.mxu1 %vm1076_vm0, %v1075_v0 }
 0x107   :  { %v329_v30 = vadd.f32 %v1242_v24, %v328_v29 }
 0x108   :  { %v925_v31 = vpop.f32.mrf.mxu0 }
 0x109   :  { %v435_v33 = vmax.f32 %v329_v30, 0.0 }
 0x10a   :  { %v333_v34 = vpop.f32.mrf.mxu0 }
 0x10b   :  { %v465_v35 = vpack.c.bf16 %v435_v33, %v434_v32  ;;  %v334_v37 = vadd.f32 %v1242_v24, %v333_v34 }
 0x10c   :  { %v928_v36 = vpop.f32.mrf.mxu0 }
 0x10d   :  { %1003 = vmatmul.mubr.msk.bf16.gmra.mxu1 %vm177_vm1, %v465_v35  ;;  %v436_v41 = vmax.f32 %v334_v37, 0.0 }
 0x10e   :  { %v336_v38 = vpop.f32.mrf.mxu0  ;;  %1006 = vmatprep.mubr.msk.bf16.mxu1 %vm1076_vm0, %v1075_v0 }
 0x10f   :  { %v337_v39 = vadd.f32 %v1242_v24, %v336_v38 }
 0x110   :  { %v929_v40 = vpop.f32.mrf.mxu0 }
 0x111   :  { %v437_v42 = vmax.f32 %v337_v39, 0.0 }
 0x112   :  { %v341_v43 = vpop.f32.mrf.mxu0 }
 0x113   :  { %v466_v44 = vpack.c.bf16 %v437_v42, %v436_v41  ;;  %v342_v46 = vadd.f32 %v1242_v24, %v341_v43 }
 0x114   :  { %v932_v45 = vpop.f32.mrf.mxu0 }
 0x115   :  { %1007 = vmatmul.mubr.msk.bf16.gmra.mxu1 %vm177_vm1, %v466_v44  ;;  %v438_v50 = vmax.f32 %v342_v46, 0.0 }
 0x116   :  { %v344_v47 = vpop.f32.mrf.mxu0  ;;  %1010 = vmatprep.mubr.msk.bf16.mxu1 %vm1076_vm0, %v1075_v0 }
 0x117   :  { %v345_v48 = vadd.f32 %v1242_v24, %v344_v47 }
 0x118   :  { %v933_v49 = vpop.f32.mrf.mxu0 }
 0x119   :  { %v439_v51 = vmax.f32 %v345_v48, 0.0 }
 0x11a   :  { %v349_v52 = vpop.f32.mrf.mxu0 }
 0x11b   :  { %v467_v53 = vpack.c.bf16 %v439_v51, %v438_v50  ;;  %v350_v55 = vadd.f32 %v1242_v24, %v349_v52 }
 0x11c   :  { %v936_v54 = vpop.f32.mrf.mxu0 }
 0x11d   :  { %1011 = vmatmul.mubr.msk.bf16.gmra.mxu1 %vm177_vm1, %v467_v53  ;;  %v440_v59 = vmax.f32 %v350_v55, 0.0 }
 0x11e   :  { %v352_v56 = vpop.f32.mrf.mxu0  ;;  %1014 = vmatprep.mubr.msk.bf16.mxu1 %vm1076_vm0, %v1075_v0 }
 0x11f   :  { %v353_v57 = vadd.f32 %v1242_v24, %v352_v56 }
 0x120   :  { %v937_v58 = vpop.f32.mrf.mxu0 }
 0x121   :  { %v441_v60 = vmax.f32 %v353_v57, 0.0 }
 0x122   :  { %v357_v61 = vpop.f32.mrf.mxu0 }
 0x123   :  { %v468_v62 = vpack.c.bf16 %v441_v60, %v440_v59  ;;  %v358_v1 = vadd.f32 %v1242_v24, %v357_v61 }
 0x124   :  { %v940_v63 = vpop.f32.mrf.mxu0 }
 0x125   :  { %1015 = vmatmul.mubr.msk.bf16.gmra.mxu1 %vm177_vm1, %v468_v62  ;;  %v442_v5 = vmax.f32 %v358_v1, 0.0 }
 0x126   :  { %v360_v2 = vpop.f32.mrf.mxu0  ;;  %1018 = vmatprep.mubr.msk.bf16.mxu1 %vm1076_vm0, %v1075_v0 }
 0x127   :  { %v361_v3 = vadd.f32 %v1242_v24, %v360_v2 }
 0x128   :  { %v941_v4 = vpop.f32.mrf.mxu0 }
 0x129   :  { %v443_v6 = vmax.f32 %v361_v3, 0.0 }
 0x12a   :  { %v365_v7 = vpop.f32.mrf.mxu0 }
 0x12b   :  { %v469_v8 = vpack.c.bf16 %v443_v6, %v442_v5  ;;  %v366_v10 = vadd.f32 %v1242_v24, %v365_v7 }
 0x12c   :  { %v944_v9 = vpop.f32.mrf.mxu0 }
 0x12d   :  { %1019 = vmatmul.mubr.msk.bf16.gmra.mxu1 %vm177_vm1, %v469_v8  ;;  %v444_v14 = vmax.f32 %v366_v10, 0.0  ;;  %v1340_v9 = vld [vmem:[%s1536_s4] ss:$0 sm:$0xff] }
 0x12e   :  { %v368_v11 = vpop.f32.mrf.mxu0  ;;  %1022 = vmatprep.mubr.msk.bf16.mxu1 %vm1076_vm0, %v1075_v0 }
 0x12f   :  { %v369_v12 = vadd.f32 %v1242_v24, %v368_v11 }
 0x130   :  { %v945_v13 = vpop.f32.mrf.mxu0 }
 0x131   :  { %v445_v15 = vmax.f32 %v369_v12, 0.0 }
 0x132   :  { %v373_v16 = vpop.f32.mrf.mxu0 }
 0x133   :  { %v470_v17 = vpack.c.bf16 %v445_v15, %v444_v14  ;;  %v374_v19 = vadd.f32 %v1242_v24, %v373_v16 }
 0x134   :  { %v948_v18 = vpop.f32.mrf.mxu0 }
 0x135   :  { %1023 = vmatmul.mubr.msk.bf16.gmra.mxu1 %vm177_vm1, %v470_v17  ;;  %v446_v23 = vmax.f32 %v374_v19, 0.0 }
 0x136   :  { %v376_v20 = vpop.f32.mrf.mxu0  ;;  %1026 = vmatprep.mubr.msk.bf16.mxu1 %vm1076_vm0, %v1075_v0 }
 0x137   :  { %v377_v21 = vadd.f32 %v1242_v24, %v376_v20 }
 0x138   :  { %v949_v22 = vpop.f32.mrf.mxu0 }
 0x139   :  { %v447_v25 = vmax.f32 %v377_v21, 0.0 }
 0x13a   :  { %v381_v26 = vpop.f32.mrf.mxu0 }
 0x13b   :  { %v471_v27 = vpack.c.bf16 %v447_v25, %v446_v23  ;;  %v382_v29 = vadd.f32 %v1242_v24, %v381_v26 }
 0x13c   :  { %v952_v28 = vpop.f32.mrf.mxu0 }
 0x13d   :  { %1027 = vmatmul.mubr.msk.bf16.gmra.mxu1 %vm177_vm1, %v471_v27  ;;  %v448_v33 = vmax.f32 %v382_v29, 0.0 }
 0x13e   :  { %v384_v30 = vpop.f32.mrf.mxu0  ;;  %1030 = vmatprep.mubr.msk.bf16.mxu1 %vm1076_vm0, %v1075_v0 }
 0x13f   :  { %v385_v31 = vadd.f32 %v1242_v24, %v384_v30 }
 0x140   :  { %v953_v32 = vpop.f32.mrf.mxu0 }
 0x141   :  { %v449_v34 = vmax.f32 %v385_v31, 0.0 }
 0x142   :  { %v389_v35 = vpop.f32.mrf.mxu0 }
 0x143   :  { %v472_v36 = vpack.c.bf16 %v449_v34, %v448_v33  ;;  %v390_v38 = vadd.f32 %v1242_v24, %v389_v35 }
 0x144   :  { %v956_v37 = vpop.f32.mrf.mxu0 }
 0x145   :  { %1031 = vmatmul.mubr.msk.bf16.gmra.mxu1 %vm177_vm1, %v472_v36  ;;  %v450_v42 = vmax.f32 %v390_v38, 0.0 }
 0x146   :  { %v392_v39 = vpop.f32.mrf.mxu0  ;;  %1034 = vmatprep.mubr.msk.bf16.mxu1 %vm1076_vm0, %v1075_v0 }
 0x147   :  { %v393_v40 = vadd.f32 %v1242_v24, %v392_v39 }
 0x148   :  { %v957_v41 = vpop.f32.mrf.mxu0 }
 0x149   :  { %v451_v43 = vmax.f32 %v393_v40, 0.0 }
 0x14a   :  { %v397_v44 = vpop.f32.mrf.mxu0 }
 0x14b   :  { %v473_v45 = vpack.c.bf16 %v451_v43, %v450_v42  ;;  %v398_v47 = vadd.f32 %v1242_v24, %v397_v44 }
 0x14c   :  { %v960_v46 = vpop.f32.mrf.mxu0 }
 0x14d   :  { %1035 = vmatmul.mubr.msk.bf16.gmra.mxu1 %vm177_vm1, %v473_v45  ;;  %v452_v51 = vmax.f32 %v398_v47, 0.0 }
 0x14e   :  { %v400_v48 = vpop.f32.mrf.mxu0  ;;  %1038 = vmatprep.mubr.msk.bf16.mxu1 %vm1076_vm0, %v1075_v0 }
 0x14f   :  { %v401_v49 = vadd.f32 %v1242_v24, %v400_v48 }
 0x150   :  { %v961_v50 = vpop.f32.mrf.mxu0 }
 0x151   :  { %v453_v52 = vmax.f32 %v401_v49, 0.0 }
 0x152   :  { %v405_v53 = vpop.f32.mrf.mxu0 }
 0x153   :  { %v474_v54 = vpack.c.bf16 %v453_v52, %v452_v51  ;;  %v406_v56 = vadd.f32 %v1242_v24, %v405_v53 }
 0x154   :  { %v964_v55 = vpop.f32.mrf.mxu0 }
 0x155   :  { %1039 = vmatmul.mubr.msk.bf16.gmra.mxu1 %vm177_vm1, %v474_v54  ;;  %v454_v60 = vmax.f32 %v406_v56, 0.0 }
 0x156   :  { %v408_v57 = vpop.f32.mrf.mxu0  ;;  %1042 = vmatprep.mubr.msk.bf16.mxu1 %vm1076_vm0, %v1075_v0 }
 0x157   :  { %v409_v58 = vadd.f32 %v1242_v24, %v408_v57 }
 0x158   :  { %v965_v59 = vpop.f32.mrf.mxu0 }
 0x159   :  { %v455_v61 = vmax.f32 %v409_v58, 0.0 }
 0x15a   :  { %v413_v62 = vpop.f32.mrf.mxu0 }
 0x15b   :  { %v475_v63 = vpack.c.bf16 %v455_v61, %v454_v60  ;;  %v414_v2 = vadd.f32 %v1242_v24, %v413_v62 }
 0x15c   :  { %v968_v1 = vpop.f32.mrf.mxu0 }
 0x15d   :  { %1043 = vmatmul.mubr.msk.bf16.gmra.mxu1 %vm177_vm1, %v475_v63  ;;  %v456_v6 = vmax.f32 %v414_v2, 0.0 }
 0x15e   :  { %v416_v3 = vpop.f32.mrf.mxu0  ;;  %1046 = vmatprep.mubr.msk.bf16.mxu1 %vm1076_vm0, %v1075_v0 }
 0x15f   :  { %v417_v4 = vadd.f32 %v1242_v24, %v416_v3 }
 0x160   :  { %v969_v5 = vpop.f32.mrf.mxu0 }
 0x161   :  { %v457_v7 = vmax.f32 %v417_v4, 0.0 }
 0x163   :  { %v476_v8 = vpack.c.bf16 %v457_v7, %v456_v6 }
 0x165   :  { %1047 = vmatmul.mubr.msk.bf16.gmra.mxu1 %vm177_vm1, %v476_v8 }
 0x195   :  { %v591_v10 = vpop.f32.mrf.mxu1 }
 0x196   :  { %v592_v11 = vadd.f32 %v1340_v9, %v591_v10 }
 0x197   :  { %v976_v12 = vpop.f32.mrf.mxu1 }
 0x198   :  { %743 = vst.msk [vmem:[%s1537_s5] sm:$0xff] %vm742_vm2, %v592_v11 }
 0x199   :  { %v594_v0 = vpop.f32.mrf.mxu1 }
 0x19a   :  { %v595_v24 = vadd.f32 %v1340_v9, %v594_v0 }
 0x19b   :  { %v977_v13 = vpop.f32.mrf.mxu1 }
 0x19c   :  { %744 = vst.msk [vmem:[%s1537_s5 + $0x8] sm:$0xff] %vm742_vm2, %v595_v24 }
 0x19d   :  { %v599_v14 = vpop.f32.mrf.mxu1 }
 0x19e   :  { %v600_v15 = vadd.f32 %v1340_v9, %v599_v14 }
 0x19f   :  { %v980_v16 = vpop.f32.mrf.mxu1 }
 0x1a0   :  { %745 = vst.msk [vmem:[%s1537_s5 + $0x10] sm:$0xff] %vm742_vm2, %v600_v15 }
 0x1a1   :  { %v602_v17 = vpop.f32.mrf.mxu1 }
 0x1a2   :  { %v603_v18 = vadd.f32 %v1340_v9, %v602_v17 }
 0x1a3   :  { %v981_v19 = vpop.f32.mrf.mxu1 }
 0x1a4   :  { %746 = vst.msk [vmem:[%s1537_s5 + $0x18] sm:$0xff] %vm742_vm2, %v603_v18 }
 0x1a5   :  { %v607_v20 = vpop.f32.mrf.mxu1 }
 0x1a6   :  { %v608_v21 = vadd.f32 %v1340_v9, %v607_v20 }
 0x1a7   :  { %v984_v22 = vpop.f32.mrf.mxu1 }
 0x1a8   :  { %747 = vst.msk [vmem:[%s1537_s5 + $0x20] sm:$0xff] %vm742_vm2, %v608_v21 }
 0x1a9   :  { %v610_v23 = vpop.f32.mrf.mxu1 }
 0x1aa   :  { %v611_v25 = vadd.f32 %v1340_v9, %v610_v23 }
 0x1ab   :  { %v985_v26 = vpop.f32.mrf.mxu1 }
 0x1ac   :  { %748 = vst.msk [vmem:[%s1537_s5 + $0x28] sm:$0xff] %vm742_vm2, %v611_v25 }
 0x1ad   :  { %v615_v27 = vpop.f32.mrf.mxu1 }
 0x1ae   :  { %v616_v28 = vadd.f32 %v1340_v9, %v615_v27 }
 0x1af   :  { %v988_v29 = vpop.f32.mrf.mxu1 }
 0x1b0   :  { %749 = vst.msk [vmem:[%s1537_s5 + $0x30] sm:$0xff] %vm742_vm2, %v616_v28 }
 0x1b1   :  { %v618_v30 = vpop.f32.mrf.mxu1 }
 0x1b2   :  { %v619_v31 = vadd.f32 %v1340_v9, %v618_v30 }
 0x1b3   :  { %v989_v32 = vpop.f32.mrf.mxu1 }
 0x1b4   :  { %750 = vst.msk [vmem:[%s1537_s5 + $0x38] sm:$0xff] %vm742_vm2, %v619_v31 }
 0x1b5   :  { %v623_v33 = vpop.f32.mrf.mxu1 }
 0x1b6   :  { %v624_v34 = vadd.f32 %v1340_v9, %v623_v33 }
 0x1b7   :  { %v992_v35 = vpop.f32.mrf.mxu1 }
 0x1b8   :  { %751 = vst.msk [vmem:[%s1537_s5 + $0x40] sm:$0xff] %vm742_vm2, %v624_v34 }
 0x1b9   :  { %v626_v36 = vpop.f32.mrf.mxu1 }
 0x1ba   :  { %v627_v37 = vadd.f32 %v1340_v9, %v626_v36 }
 0x1bb   :  { %v993_v38 = vpop.f32.mrf.mxu1 }
 0x1bc   :  { %752 = vst.msk [vmem:[%s1537_s5 + $0x48] sm:$0xff] %vm742_vm2, %v627_v37 }
 0x1bd   :  { %v631_v39 = vpop.f32.mrf.mxu1 }
 0x1be   :  { %v632_v40 = vadd.f32 %v1340_v9, %v631_v39 }
 0x1bf   :  { %v996_v41 = vpop.f32.mrf.mxu1 }
 0x1c0   :  { %753 = vst.msk [vmem:[%s1537_s5 + $0x50] sm:$0xff] %vm742_vm2, %v632_v40 }
 0x1c1   :  { %v634_v42 = vpop.f32.mrf.mxu1 }
 0x1c2   :  { %v635_v43 = vadd.f32 %v1340_v9, %v634_v42 }
 0x1c3   :  { %v997_v44 = vpop.f32.mrf.mxu1 }
 0x1c4   :  { %754 = vst.msk [vmem:[%s1537_s5 + $0x58] sm:$0xff] %vm742_vm2, %v635_v43 }
 0x1c5   :  { %v639_v45 = vpop.f32.mrf.mxu1 }
 0x1c6   :  { %v640_v46 = vadd.f32 %v1340_v9, %v639_v45 }
 0x1c7   :  { %v1000_v47 = vpop.f32.mrf.mxu1 }
 0x1c8   :  { %755 = vst.msk [vmem:[%s1537_s5 + $0x60] sm:$0xff] %vm742_vm2, %v640_v46 }
 0x1c9   :  { %v642_v48 = vpop.f32.mrf.mxu1 }
 0x1ca   :  { %v643_v49 = vadd.f32 %v1340_v9, %v642_v48 }
 0x1cb   :  { %v1001_v50 = vpop.f32.mrf.mxu1 }
 0x1cc   :  { %756 = vst.msk [vmem:[%s1537_s5 + $0x68] sm:$0xff] %vm742_vm2, %v643_v49 }
 0x1cd   :  { %v647_v51 = vpop.f32.mrf.mxu1 }
 0x1ce   :  { %v648_v52 = vadd.f32 %v1340_v9, %v647_v51 }
 0x1cf   :  { %v1004_v53 = vpop.f32.mrf.mxu1 }
 0x1d0   :  { %757 = vst.msk [vmem:[%s1537_s5 + $0x70] sm:$0xff] %vm742_vm2, %v648_v52 }
 0x1d1   :  { %v650_v54 = vpop.f32.mrf.mxu1 }
 0x1d2   :  { %v651_v55 = vadd.f32 %v1340_v9, %v650_v54 }
 0x1d3   :  { %v1005_v56 = vpop.f32.mrf.mxu1 }
 0x1d4   :  { %758 = vst.msk [vmem:[%s1537_s5 + $0x78] sm:$0xff] %vm742_vm2, %v651_v55 }
 0x1d5   :  { %v655_v57 = vpop.f32.mrf.mxu1 }
 0x1d6   :  { %v656_v58 = vadd.f32 %v1340_v9, %v655_v57 }
 0x1d7   :  { %v1008_v59 = vpop.f32.mrf.mxu1 }
 0x1d8   :  { %759 = vst.msk [vmem:[%s1537_s5 + $0x80] sm:$0xff] %vm742_vm2, %v656_v58 }
 0x1d9   :  { %v658_v60 = vpop.f32.mrf.mxu1 }
 0x1da   :  { %v659_v61 = vadd.f32 %v1340_v9, %v658_v60 }
 0x1db   :  { %v1009_v62 = vpop.f32.mrf.mxu1 }
 0x1dc   :  { %760 = vst.msk [vmem:[%s1537_s5 + $0x88] sm:$0xff] %vm742_vm2, %v659_v61 }
 0x1dd   :  { %v663_v63 = vpop.f32.mrf.mxu1 }
 0x1de   :  { %v664_v1 = vadd.f32 %v1340_v9, %v663_v63 }
 0x1df   :  { %v1012_v2 = vpop.f32.mrf.mxu1 }
 0x1e0   :  { %761 = vst.msk [vmem:[%s1537_s5 + $0x90] sm:$0xff] %vm742_vm2, %v664_v1 }
 0x1e1   :  { %v666_v3 = vpop.f32.mrf.mxu1 }
 0x1e2   :  { %v667_v4 = vadd.f32 %v1340_v9, %v666_v3 }
 0x1e3   :  { %v1013_v5 = vpop.f32.mrf.mxu1 }
 0x1e4   :  { %762 = vst.msk [vmem:[%s1537_s5 + $0x98] sm:$0xff] %vm742_vm2, %v667_v4 }
 0x1e5   :  { %v671_v6 = vpop.f32.mrf.mxu1 }
 0x1e6   :  { %v672_v7 = vadd.f32 %v1340_v9, %v671_v6 }
 0x1e7   :  { %v1016_v8 = vpop.f32.mrf.mxu1 }
 0x1e8   :  { %763 = vst.msk [vmem:[%s1537_s5 + $0xa0] sm:$0xff] %vm742_vm2, %v672_v7 }
 0x1e9   :  { %v674_v10 = vpop.f32.mrf.mxu1 }
 0x1ea   :  { %v675_v11 = vadd.f32 %v1340_v9, %v674_v10 }
 0x1eb   :  { %v1017_v12 = vpop.f32.mrf.mxu1 }
 0x1ec   :  { %764 = vst.msk [vmem:[%s1537_s5 + $0xa8] sm:$0xff] %vm742_vm2, %v675_v11 }
 0x1ed   :  { %v679_v0 = vpop.f32.mrf.mxu1 }
 0x1ee   :  { %v680_v24 = vadd.f32 %v1340_v9, %v679_v0 }
 0x1ef   :  { %v1020_v13 = vpop.f32.mrf.mxu1 }
 0x1f0   :  { %765 = vst.msk [vmem:[%s1537_s5 + $0xb0] sm:$0xff] %vm742_vm2, %v680_v24 }
 0x1f1   :  { %v682_v14 = vpop.f32.mrf.mxu1 }
 0x1f2   :  { %v683_v15 = vadd.f32 %v1340_v9, %v682_v14 }
 0x1f3   :  { %v1021_v16 = vpop.f32.mrf.mxu1 }
 0x1f4   :  { %766 = vst.msk [vmem:[%s1537_s5 + $0xb8] sm:$0xff] %vm742_vm2, %v683_v15 }
 0x1f5   :  { %v687_v17 = vpop.f32.mrf.mxu1 }
 0x1f6   :  { %v688_v18 = vadd.f32 %v1340_v9, %v687_v17 }
 0x1f7   :  { %v1024_v19 = vpop.f32.mrf.mxu1 }
 0x1f8   :  { %767 = vst.msk [vmem:[%s1537_s5 + $0xc0] sm:$0xff] %vm742_vm2, %v688_v18 }
 0x1f9   :  { %v690_v20 = vpop.f32.mrf.mxu1 }
 0x1fa   :  { %v691_v21 = vadd.f32 %v1340_v9, %v690_v20 }
 0x1fb   :  { %v1025_v22 = vpop.f32.mrf.mxu1 }
 0x1fc   :  { %768 = vst.msk [vmem:[%s1537_s5 + $0xc8] sm:$0xff] %vm742_vm2, %v691_v21 }
 0x1fd   :  { %v695_v23 = vpop.f32.mrf.mxu1 }
 0x1fe   :  { %v696_v25 = vadd.f32 %v1340_v9, %v695_v23 }
 0x1ff   :  { %v1028_v26 = vpop.f32.mrf.mxu1 }
 0x200   :  { %769 = vst.msk [vmem:[%s1537_s5 + $0xd0] sm:$0xff] %vm742_vm2, %v696_v25 }
 0x201   :  { %v698_v27 = vpop.f32.mrf.mxu1 }
 0x202   :  { %v699_v28 = vadd.f32 %v1340_v9, %v698_v27 }
 0x203   :  { %v1029_v29 = vpop.f32.mrf.mxu1 }
 0x204   :  { %770 = vst.msk [vmem:[%s1537_s5 + $0xd8] sm:$0xff] %vm742_vm2, %v699_v28 }
 0x205   :  { %v703_v30 = vpop.f32.mrf.mxu1 }
 0x206   :  { %v704_v31 = vadd.f32 %v1340_v9, %v703_v30 }
 0x207   :  { %v1032_v32 = vpop.f32.mrf.mxu1 }
 0x208   :  { %771 = vst.msk [vmem:[%s1537_s5 + $0xe0] sm:$0xff] %vm742_vm2, %v704_v31 }
 0x209   :  { %v706_v33 = vpop.f32.mrf.mxu1 }
 0x20a   :  { %v707_v34 = vadd.f32 %v1340_v9, %v706_v33 }
 0x20b   :  { %v1033_v35 = vpop.f32.mrf.mxu1 }
 0x20c   :  { %772 = vst.msk [vmem:[%s1537_s5 + $0xe8] sm:$0xff] %vm742_vm2, %v707_v34 }
 0x20d   :  { %v711_v36 = vpop.f32.mrf.mxu1 }
 0x20e   :  { %v712_v37 = vadd.f32 %v1340_v9, %v711_v36 }
 0x20f   :  { %v1036_v38 = vpop.f32.mrf.mxu1 }
 0x210   :  { %773 = vst.msk [vmem:[%s1537_s5 + $0xf0] sm:$0xff] %vm742_vm2, %v712_v37 }
 0x211   :  { %v714_v39 = vpop.f32.mrf.mxu1 }
 0x212   :  { %v715_v40 = vadd.f32 %v1340_v9, %v714_v39 }
 0x213   :  { %v1037_v41 = vpop.f32.mrf.mxu1 }
 0x214   :  { %774 = vst.msk [vmem:[%s1537_s5 + $0xf8] sm:$0xff] %vm742_vm2, %v715_v40 }
 0x215   :  { %v719_v42 = vpop.f32.mrf.mxu1 }
 0x216   :  { %v720_v43 = vadd.f32 %v1340_v9, %v719_v42 }
 0x217   :  { %v1040_v44 = vpop.f32.mrf.mxu1 }
 0x218   :  { %775 = vst.msk [vmem:[%s1537_s5 + $0x100] sm:$0xff] %vm742_vm2, %v720_v43 }
 0x219   :  { %v722_v45 = vpop.f32.mrf.mxu1 }
 0x21a   :  { %v723_v46 = vadd.f32 %v1340_v9, %v722_v45 }
 0x21b   :  { %v1041_v47 = vpop.f32.mrf.mxu1 }
 0x21c   :  { %776 = vst.msk [vmem:[%s1537_s5 + $0x108] sm:$0xff] %vm742_vm2, %v723_v46 }
 0x21d   :  { %v727_v48 = vpop.f32.mrf.mxu1 }
 0x21e   :  { %v728_v49 = vadd.f32 %v1340_v9, %v727_v48 }
 0x21f   :  { %v1044_v50 = vpop.f32.mrf.mxu1 }
 0x220   :  { %777 = vst.msk [vmem:[%s1537_s5 + $0x110] sm:$0xff] %vm742_vm2, %v728_v49 }
 0x221   :  { %v730_v51 = vpop.f32.mrf.mxu1 }
 0x222   :  { %v731_v52 = vadd.f32 %v1340_v9, %v730_v51 }
 0x223   :  { %v1045_v53 = vpop.f32.mrf.mxu1 }
 0x224   :  { %778 = vst.msk [vmem:[%s1537_s5 + $0x118] sm:$0xff] %vm742_vm2, %v731_v52 }
 0x225   :  { %v735_v54 = vpop.f32.mrf.mxu1 }
 0x226   :  { %v736_v55 = vadd.f32 %v1340_v9, %v735_v54 }
 0x227   :  { %v1048_v56 = vpop.f32.mrf.mxu1 }
 0x228   :  { %779 = vst.msk [vmem:[%s1537_s5 + $0x120] sm:$0xff] %vm742_vm2, %v736_v55 }
 0x229   :  { %v738_v57 = vpop.f32.mrf.mxu1 }
 0x22a   :  { %v739_v58 = vadd.f32 %v1340_v9, %v738_v57 }
 0x22b   :  { %v1049_v59 = vpop.f32.mrf.mxu1 }
 0x22c   :  { %780 = vst.msk [vmem:[%s1537_s5 + $0x128] sm:$0xff] %vm742_vm2, %v739_v58 }

</bundles_post_ra>
